<compile_context>
chip_gen: v5e
topology: v5e:2x2
jax: 0.10.0
libtpu: 0.0.40
codegen_flags: <defaults>
</compile_context>

<pallas_src>
from functools import partial

import numpy as np
import jax
import jax.numpy as jnp
from jax import lax
from jax.experimental import pallas as pl
from jax.experimental.pallas import tpu as pltpu


def _lrelu(y):
    # LeakyReLU(0.1)
    return jnp.where(y > 0, y, 0.1 * y)


# ---------------------------------------------------------------------------
# pltpu.roll rotation-direction probe (cached).  The kernel only relies on
# "rotate with wraparound"; the direction is detected once at runtime so the
# static shift amounts below are always correct.  Any surprise -> "concat"
# fallback (correct by construction, marginally slower).
# ---------------------------------------------------------------------------
_SHIFT_MODE = None


def _detect_shift_mode():
    global _SHIFT_MODE
    if _SHIFT_MODE is not None:
        return _SHIFT_MODE

    def probe_kernel(x_ref, o_ref):
        o_ref[...] = pltpu.roll(x_ref[...], 1, axis=1)

    try:
        base = np.arange(128, dtype=np.float32)
        x = jnp.asarray(np.tile(base, (8, 1)))
        y = np.asarray(
            pl.pallas_call(
                probe_kernel,
                out_shape=jax.ShapeDtypeStruct((8, 128), jnp.float32),
            )(x))
        if np.array_equal(y[0], np.roll(base, 1)):
            _SHIFT_MODE = "roll_jnp"   # element i -> index i+1 (jnp.roll semantics)
        elif np.array_equal(y[0], np.roll(base, -1)):
            _SHIFT_MODE = "roll_neg"   # element i -> index i-1
        else:
            _SHIFT_MODE = "concat"
    except Exception:
        _SHIFT_MODE = "concat"
    return _SHIFT_MODE


def _lane_shift(v, offset, size, mode):
    """out[..., j] = v[..., (j + offset) % size]  (lane-axis rotation)."""
    off = offset % size
    if off == 0:
        return v
    if mode == "roll_jnp":
        return pltpu.roll(v, size - off, axis=1)
    if mode == "roll_neg":
        return pltpu.roll(v, off, axis=1)
    # Fallback: explicit rotate via lane-slice concat (no direction ambiguity).
    return jnp.concatenate([v[:, off:], v[:, :off]], axis=1)


# ---------------------------------------------------------------------------
# Kernel
# ---------------------------------------------------------------------------
def _rubik_kernel(x_ref, m_ref, w_ref, o_ref, *, gc, H, W, sp, bt, nc, x2c,
                  shift_mode):
    HW = H * W
    g2 = 2 * gc                    # 8: two gc-groups per 8-sublane tile (gc == 4)
    kf = 4 * g2 + x2c              # padded feat rows for the fused output conv

    # ---- grid-step invariant loads (hoisted out of the per-image loop) ----
    W1 = w_ref[0:g2, 0 * g2:1 * g2]
    W2 = w_ref[0:g2, 1 * g2:2 * g2]
    W3 = w_ref[0:g2, 2 * g2:3 * g2]
    W4 = w_ref[0:g2, 3 * g2:4 * g2]
    b1 = w_ref[0:g2, 4 * g2 + 0:4 * g2 + 1]
    b2 = w_ref[0:g2, 4 * g2 + 1:4 * g2 + 2]
    b3 = w_ref[0:g2, 4 * g2 + 2:4 * g2 + 3]
    b4 = w_ref[0:g2, 4 * g2 + 3:4 * g2 + 4]
    Wo = w_ref[g2:g2 + nc, 0:kf]
    bo = w_ref[g2:g2 + nc, kf:kf + 1]

    # precomputed shift masks, broadcast ONCE (never inside the loop — JAX
    # does not CSE broadcast_in_dim).
    m1 = jnp.broadcast_to(m_ref[0:1, :], (g2, HW))
    m2 = jnp.broadcast_to(m_ref[1:2, :], (g2, HW))
    m3 = jnp.broadcast_to(m_ref[2:3, :], (g2, HW))
    m4 = jnp.broadcast_to(m_ref[3:4, :], (g2, HW))

    def body(b, carry):
        xb = x_ref[b]                          # (nc, HW) -- one image
        A = xb[0:g2, :]                        # channels [c1 | c2]  (aligned)
        Bc = xb[g2:2 * g2, :]                  # channels [c3 | c4]  (aligned)

        # shift_feat on the flattened spatial axis: XLU rolls + mask of the wrap.
        c1s = _lane_shift(A, +sp, HW, shift_mode) * m1   # shift left  by sp (W dir)
        c2s = _lane_shift(A, -1, HW, shift_mode) * m2    # shift right by 1  (W dir)
        c3s = _lane_shift(Bc, +W, HW, shift_mode) * m3   # shift up    by 1 row
        c4s = _lane_shift(Bc, -W, HW, shift_mode) * m4   # shift down  by 1 row

        # Gated chain of 1x1 convs.  The 4x4 stage weights were zero-padded to
        # 8x8 wrapper-side so every stage reads only the half of the 8-row
        # chunk holding its real group and writes its result to the half the
        # next gating multiply needs (everything stays 8-sublane aligned):
        #   P1: c1p in rows 4:8,  P2: c2p in rows 0:4,
        #   P3: c3p in rows 4:8,  P4: c4p in rows 0:4.   (pad rows are exactly 0)
        P1 = _lrelu(jnp.dot(W1, c1s, preferred_element_type=jnp.float32) + b1)
        P2 = _lrelu(jnp.dot(W2, P1 * c2s, preferred_element_type=jnp.float32) + b2)
        P3 = _lrelu(jnp.dot(W3, P2 * c3s, preferred_element_type=jnp.float32) + b3)
        P4 = _lrelu(jnp.dot(W4, P3 * c4s, preferred_element_type=jnp.float32) + b4)

        # Fused output 1x1 conv: single MXU dot on an aligned zero-padded
        # activation stack (wo columns were permuted wrapper-side to match).
        pieces = [P1, P2, P3, P4]
        if x2c:
            pieces.append(xb[2 * g2:, :])
        feat = jnp.concatenate(pieces, axis=0)               # (kf, HW)
        y = jnp.dot(Wo, feat, preferred_element_type=jnp.float32) + bo
        o_ref[b] = (_lrelu(y) + xb).astype(o_ref.dtype)      # residual add
        return carry

    lax.fori_loop(0, bt, body, 0, unroll=bool(bt <= 8))


# ---------------------------------------------------------------------------
# Wrapper-side packing helpers
# ---------------------------------------------------------------------------
def _build_masks(H, W, sp, dtype):
    idx = np.arange(H * W)
    col = idx % W
    row = idx // W
    m = np.stack([
        col < max(W - sp, 0),       # group 0: shift left by sp along W
        col >= 1,                   # group 1: shift right by 1 along W
        row < H - 1,                # group 2: shift up by 1 along H
        row >= 1,                   # group 3: shift down by 1 along H
    ]).astype(np.float32)
    return jnp.asarray(m, dtype=dtype)                        # (4, H*W)


def _pack_weight_slab(params, *, gc, out_c, x2c):
    """Pack all weights/biases into one (2*gc + out_c, max(4*2gc+4, kf+1)) slab."""
    g2 = 2 * gc
    kf = 4 * g2 + x2c

    def stage(w, b, in_hi, out_hi):
        Wp = np.zeros((g2, g2), np.float32)
        bp = np.zeros((g2, 1), np.float32)
        r0 = gc if out_hi else 0
        c0 = gc if in_hi else 0
        Wp[r0:r0 + gc, c0:c0 + gc] = np.asarray(w, np.float32)
        bp[r0:r0 + gc, 0] = np.asarray(b, np.float32)
        return Wp, bp

    W1p, b1p = stage(params["w1"], params["b1"], in_hi=False, out_hi=True)
    W2p, b2p = stage(params["w2"], params["b2"], in_hi=True, out_hi=False)
    W3p, b3p = stage(params["w3"], params["b3"], in_hi=False, out_hi=True)
    W4p, b4p = stage(params["w4"], params["b4"], in_hi=True, out_hi=False)
    stage_slab = np.concatenate([W1p, W2p, W3p, W4p, b1p, b2p, b3p, b4p], axis=1)

    wo = np.asarray(params["wo"], np.float32)
    bo = np.asarray(params["bo"], np.float32)
    WoP = np.zeros((out_c, kf), np.float32)
    WoP[:, gc:g2] = wo[:, 0:gc]                        # c1p at feat rows gc:g2
    WoP[:, g2:g2 + gc] = wo[:, gc:2 * gc]              # c2p at feat rows g2:g2+gc
    WoP[:, 2 * g2 + gc:3 * g2] = wo[:, 2 * gc:3 * gc]  # c3p at feat rows 2g2+gc:3g2
    WoP[:, 3 * g2:3 * g2 + gc] = wo[:, 3 * gc:4 * gc]  # c4p at feat rows 3g2:3g2+gc
    if x2c:
        WoP[:, 4 * g2:4 * g2 + x2c] = wo[:, 4 * gc:]   # x2  at feat rows 4g2:

    ncol = max(stage_slab.shape[1], kf + 1)
    slab = np.zeros((g2 + out_c, ncol), np.float32)
    slab[0:g2, 0:stage_slab.shape[1]] = stage_slab
    slab[g2:, 0:kf] = WoP
    slab[g2:, kf] = bo
    return jnp.asarray(slab)


# ---------------------------------------------------------------------------
# Public entry point
# ---------------------------------------------------------------------------
def rubik_cube_multiply(x, params, *, gc=4, shift_pixel=1, max_block_bytes=1 << 20):
    """x: (B, nc, H, W) float32; params: dict of w1..w4, b1..b4, wo, bo."""
    B, nc, H, W = x.shape
    out_c = params["wo"].shape[0]
    if out_c != nc:
        raise ValueError("residual add requires out == nc (as in the PyTorch module)")
    if gc != 4:
        raise ValueError("kernel packs two gc-groups per 8-sublane tile (needs gc == 4)")
    if nc < 4 * gc:
        raise ValueError("nc must be >= 4*gc")
    HW = H * W
    if HW % 128 != 0:
        # TODO(synk): pad/mask the lane axis for H*W not a multiple of 128.
        raise ValueError("H*W must be a multiple of 128 for the lane-dense layout")
    x2c = nc - 4 * gc

    # How many whole images per grid block: amortise the fixed per-step cost
    # while keeping the grid axis available for megacore sharding on big B.
    per_img_bytes = nc * HW * x.dtype.itemsize
    cap = max(1, max_block_bytes // per_img_bytes)
    bt = 1
    for d in range(1, B + 1):
        if B % d == 0 and d <= cap:
            bt = d
    grid = (B // bt,)

    x_flat = x.reshape(B, nc, HW)
    masks = _build_masks(H, W, shift_pixel, x.dtype)
    wslab = _pack_weight_slab(params, gc=gc, out_c=out_c, x2c=x2c)

    kernel = partial(
        _rubik_kernel, gc=gc, H=H, W=W, sp=shift_pixel, bt=bt, nc=nc, x2c=x2c,
        shift_mode=_detect_shift_mode())

    out = pl.pallas_call(
        kernel,
        out_shape=jax.ShapeDtypeStruct((B, nc, HW), x.dtype),
        grid=grid,
        in_specs=[
            pl.BlockSpec((bt, nc, HW), lambda i: (i, 0, 0)),   # images
            pl.BlockSpec(masks.shape, lambda i: (0, 0)),       # shift masks (resident)
            pl.BlockSpec(wslab.shape, lambda i: (0, 0)),       # packed weights (resident)
        ],
        out_specs=pl.BlockSpec((bt, nc, HW), lambda i: (i, 0, 0)),
        compiler_params=pltpu.CompilerParams(
            dimension_semantics=("parallel",)),
    )(x_flat, masks, wslab)
    return out.reshape(B, nc, H, W)


# ---------------------------------------------------------------------------
# Pure-JAX reference mirroring the PyTorch forward (for verification)
# ---------------------------------------------------------------------------
def rubik_reference(x, params, *, gc=4, shift_pixel=1):
    B, C, H, W = x.shape
    sp = shift_pixel
    xs = jnp.zeros_like(x)
    xs = xs.at[:, 0 * gc:1 * gc, :, :W - sp].set(x[:, 0 * gc:1 * gc, :, sp:])
    xs = xs.at[:, 1 * gc:2 * gc, :, 1:].set(x[:, 1 * gc:2 * gc, :, :-1])
    xs = xs.at[:, 2 * gc:3 * gc, :H - 1, :].set(x[:, 2 * gc:3 * gc, 1:, :])
    xs = xs.at[:, 3 * gc:4 * gc, 1:, :].set(x[:, 3 * gc:4 * gc, :-1, :])
    xs = xs.at[:, 4 * gc:, :, :].set(x[:, 4 * gc:, :, :])

    def conv1x1(w, b, t):
        y = jnp.einsum("oi,bihw->bohw", w, t) + b[None, :, None, None]
        return jnp.where(y > 0, y, 0.1 * y)

    c1, c2, c3, c4, x2 = (xs[:, 0:gc], xs[:, gc:2 * gc], xs[:, 2 * gc:3 * gc],
                          xs[:, 3 * gc:4 * gc], xs[:, 4 * gc:])
    c1p = conv1x1(params["w1"], params["b1"], c1)
    c2p = conv1x1(params["w2"], params["b2"], c1p * c2)
    c3p = conv1x1(params["w3"], params["b3"], c2p * c3)
    c4p = conv1x1(params["w4"], params["b4"], c3p * c4)
    feat = jnp.concatenate([c1p, c2p, c3p, c4p, x2], axis=1)
    return conv1x1(params["wo"], params["bo"], feat) + x


if __name__ == "__main__":
    # module config: nc = out = 24, gc = 4, shiftPixel = 1  (x2 slice = 8 ch)
    B, nc, H, W = 2, 24, 16, 16
    gc, out_c, shift_pixel = 4, 24, 1

    keys = jax.random.split(jax.random.PRNGKey(0), 12)
    x = jax.random.normal(keys[0], (B, nc, H, W), jnp.float32)

    params = {}
    for i in range(1, 5):
        params[f"w{i}"] = 0.3 * jax.random.normal(keys[2 * i - 1], (gc, gc), jnp.float32)
        params[f"b{i}"] = 0.1 * jax.random.normal(keys[2 * i], (gc,), jnp.float32)
    params["wo"] = 0.2 * jax.random.normal(keys[9], (out_c, nc), jnp.float32)
    params["bo"] = 0.1 * jax.random.normal(keys[10], (out_c,), jnp.float32)

    y = rubik_cube_multiply(x, params, gc=gc, shift_pixel=shift_pixel)
    jax.block_until_ready(y)

    y_ref = rubik_reference(x, params, gc=gc, shift_pixel=shift_pixel)
    np.testing.assert_allclose(np.asarray(y), np.asarray(y_ref), rtol=1e-4, atol=1e-4)
    assert y.shape == (B, out_c, H, W) and y.dtype == jnp.float32

    print("KERNEL_OK")
</pallas_src>

<mosaic_0001>
module attributes {stable_mosaic.version = 11 : i64} {
  func.func @probe_kernel(%arg0: memref<8x128xf32, #tpu.memory_space<vmem>>, %arg1: memref<8x128xf32, #tpu.memory_space<vmem>>) attributes {dimension_semantics = [], scalar_prefetch = 0 : i64, scratch_operands = 0 : i64, tpu.core_type = #tpu.core_type<tc>} {
    %c0 = arith.constant 0 : index
    %c0_0 = arith.constant 0 : index
    %0 = vector.load %arg0[%c0, %c0_0] : memref<8x128xf32, #tpu.memory_space<vmem>>, vector<8x128xf32>
    %c1_i32 = arith.constant 1 : i32
    %1 = tpu.dynamic_rotate %0 by %c1_i32 dim 1 : vector<8x128xf32>, i32 -> vector<8x128xf32>
    %c0_1 = arith.constant 0 : index
    %c0_2 = arith.constant 0 : index
    %2 = vector.load %arg1[%c0_1, %c0_2] : memref<8x128xf32, #tpu.memory_space<vmem>>, vector<8x128xf32>
    tpu.vector_store %arg1[%c0_1, %c0_2], %1 {strides = array<i32>} : memref<8x128xf32, #tpu.memory_space<vmem>>, vector<8x128xf32>,
    return
  }
}

module attributes {stable_mosaic.version = 11 : i64} {
  func.func @_rubik_kernel(%arg0: i32, %arg1: memref<2x24x256xf32, #tpu.memory_space<vmem>>, %arg2: memref<4x256xf32, #tpu.memory_space<vmem>>, %arg3: memref<32x41xf32, #tpu.memory_space<vmem>>, %arg4: memref<2x24x256xf32, #tpu.memory_space<vmem>>) attributes {dimension_semantics = [#tpu.dimension_semantics<parallel>], iteration_bounds = array<i64: 1>, scalar_prefetch = 0 : i64, scratch_operands = 0 : i64, tpu.core_type = #tpu.core_type<tc>, window_params = [{transform_indices = @transform_0, window_bounds = array<i64: 2, 24, 256>}, {pipeline_mode = #tpu.pipeline_mode<synchronous>, transform_indices = @transform_1, window_bounds = array<i64: 4, 256>}, {pipeline_mode = #tpu.pipeline_mode<synchronous>, transform_indices = @transform_2, window_bounds = array<i64: 32, 41>}, {transform_indices = @transform_3, window_bounds = array<i64: 2, 24, 256>}]} {
    %c0 = arith.constant 0 : index
    %c0_0 = arith.constant 0 : index
    %0 = vector.load %arg3[%c0, %c0_0] : memref<32x41xf32, #tpu.memory_space<vmem>>, vector<8x8xf32>
    %c0_1 = arith.constant 0 : index
    %c8 = arith.constant 8 : index
    %1 = vector.load %arg3[%c0_1, %c8] : memref<32x41xf32, #tpu.memory_space<vmem>>, vector<8x8xf32>
    %c0_2 = arith.constant 0 : index
    %c16 = arith.constant 16 : index
    %2 = vector.load %arg3[%c0_2, %c16] : memref<32x41xf32, #tpu.memory_space<vmem>>, vector<8x8xf32>
    %c0_3 = arith.constant 0 : index
    %c24 = arith.constant 24 : index
    %3 = vector.load %arg3[%c0_3, %c24] : memref<32x41xf32, #tpu.memory_space<vmem>>, vector<8x8xf32>
    %c0_4 = arith.constant 0 : index
    %c32 = arith.constant 32 : index
    %4 = vector.load %arg3[%c0_4, %c32] : memref<32x41xf32, #tpu.memory_space<vmem>>, vector<8x1xf32>
    %c0_5 = arith.constant 0 : index
    %c33 = arith.constant 33 : index
    %5 = vector.load %arg3[%c0_5, %c33] : memref<32x41xf32, #tpu.memory_space<vmem>>, vector<8x1xf32>
    %c0_6 = arith.constant 0 : index
    %c34 = arith.constant 34 : index
    %6 = vector.load %arg3[%c0_6, %c34] : memref<32x41xf32, #tpu.memory_space<vmem>>, vector<8x1xf32>
    %c0_7 = arith.constant 0 : index
    %c35 = arith.constant 35 : index
    %7 = vector.load %arg3[%c0_7, %c35] : memref<32x41xf32, #tpu.memory_space<vmem>>, vector<8x1xf32>
    %c8_8 = arith.constant 8 : index
    %c0_9 = arith.constant 0 : index
    %8 = vector.load %arg3[%c8_8, %c0_9] : memref<32x41xf32, #tpu.memory_space<vmem>>, vector<24x40xf32>
    %c8_10 = arith.constant 8 : index
    %c40 = arith.constant 40 : index
    %9 = vector.load %arg3[%c8_10, %c40] : memref<32x41xf32, #tpu.memory_space<vmem>>, vector<24x1xf32>
    %c0_11 = arith.constant 0 : index
    %c0_12 = arith.constant 0 : index
    %10 = vector.load %arg2[%c0_11, %c0_12] : memref<4x256xf32, #tpu.memory_space<vmem>>, vector<1x256xf32>
    %11 = vector.shape_cast %10 : vector<1x256xf32> to vector<1x256xf32>
    %12 = vector.broadcast %11 : vector<1x256xf32> to vector<8x256xf32>
    %c1 = arith.constant 1 : index
    %c0_13 = arith.constant 0 : index
    %13 = vector.load %arg2[%c1, %c0_13] : memref<4x256xf32, #tpu.memory_space<vmem>>, vector<1x256xf32>
    %14 = vector.shape_cast %13 : vector<1x256xf32> to vector<1x256xf32>
    %15 = vector.broadcast %14 : vector<1x256xf32> to vector<8x256xf32>
    %c2 = arith.constant 2 : index
    %c0_14 = arith.constant 0 : index
    %16 = vector.load %arg2[%c2, %c0_14] : memref<4x256xf32, #tpu.memory_space<vmem>>, vector<1x256xf32>
    %17 = vector.shape_cast %16 : vector<1x256xf32> to vector<1x256xf32>
    %18 = vector.broadcast %17 : vector<1x256xf32> to vector<8x256xf32>
    %c3 = arith.constant 3 : index
    %c0_15 = arith.constant 0 : index
    %19 = vector.load %arg2[%c3, %c0_15] : memref<4x256xf32, #tpu.memory_space<vmem>>, vector<1x256xf32>
    %20 = vector.shape_cast %19 : vector<1x256xf32> to vector<1x256xf32>
    %21 = vector.broadcast %20 : vector<1x256xf32> to vector<8x256xf32>
    %c0_i32 = arith.constant 0 : i32
    %22 = arith.index_cast %c0_i32 : i32 to index
    %c0_16 = arith.constant 0 : index
    %c0_17 = arith.constant 0 : index
    %23 = vector.load %arg1[%22, %c0_16, %c0_17] : memref<2x24x256xf32, #tpu.memory_space<vmem>>, vector<1x24x256xf32>
    %24 = vector.shape_cast %23 : vector<1x24x256xf32> to vector<24x256xf32>
    %25 = vector.extract_strided_slice %24 {offsets = [0, 0], sizes = [8, 256], strides = [1, 1]} : vector<24x256xf32> to vector<8x256xf32>
    %26 = vector.extract_strided_slice %24 {offsets = [8, 0], sizes = [8, 256], strides = [1, 1]} : vector<24x256xf32> to vector<8x256xf32>
    %27 = vector.extract_strided_slice %25 {offsets = [0, 1], sizes = [8, 255], strides = [1, 1]} : vector<8x256xf32> to vector<8x255xf32>
    %28 = vector.extract_strided_slice %25 {offsets = [0, 0], sizes = [8, 1], strides = [1, 1]} : vector<8x256xf32> to vector<8x1xf32>
    %29 = tpu.concatenate %27, %28 in 1 : vector<8x255xf32>, vector<8x1xf32> -> vector<8x256xf32>
    %30 = arith.mulf %29, %12 : vector<8x256xf32>
    %31 = vector.extract_strided_slice %25 {offsets = [0, 255], sizes = [8, 1], strides = [1, 1]} : vector<8x256xf32> to vector<8x1xf32>
    %32 = vector.extract_strided_slice %25 {offsets = [0, 0], sizes = [8, 255], strides = [1, 1]} : vector<8x256xf32> to vector<8x255xf32>
    %33 = tpu.concatenate %31, %32 in 1 : vector<8x1xf32>, vector<8x255xf32> -> vector<8x256xf32>
    %34 = arith.mulf %33, %15 : vector<8x256xf32>
    %35 = vector.extract_strided_slice %26 {offsets = [0, 16], sizes = [8, 240], strides = [1, 1]} : vector<8x256xf32> to vector<8x240xf32>
    %36 = vector.extract_strided_slice %26 {offsets = [0, 0], sizes = [8, 16], strides = [1, 1]} : vector<8x256xf32> to vector<8x16xf32>
    %37 = tpu.concatenate %35, %36 in 1 : vector<8x240xf32>, vector<8x16xf32> -> vector<8x256xf32>
    %38 = arith.mulf %37, %18 : vector<8x256xf32>
    %39 = vector.extract_strided_slice %26 {offsets = [0, 240], sizes = [8, 16], strides = [1, 1]} : vector<8x256xf32> to vector<8x16xf32>
    %40 = vector.extract_strided_slice %26 {offsets = [0, 0], sizes = [8, 240], strides = [1, 1]} : vector<8x256xf32> to vector<8x240xf32>
    %41 = tpu.concatenate %39, %40 in 1 : vector<8x16xf32>, vector<8x240xf32> -> vector<8x256xf32>
    %42 = arith.mulf %41, %21 : vector<8x256xf32>
    %cst = arith.constant dense<0.000000e+00> : vector<8x256xf32>
    %43 = tpu.matmul %0, %30, %cst {dimension_numbers = #tpu.dot_dimension_numbers<[1], [0], [0], [1], [0, 0, 1, 1], [], []>} : vector<8x8xf32>, vector<8x256xf32>, vector<8x256xf32> -> vector<8x256xf32>
    %44 = vector.broadcast %4 : vector<8x1xf32> to vector<8x256xf32>
    %45 = arith.addf %43, %44 : vector<8x256xf32>
    %cst_18 = arith.constant 0.000000e+00 : f32
    %46 = vector.broadcast %cst_18 : f32 to vector<8x256xf32>
    %47 = arith.cmpf ogt, %45, %46 : vector<8x256xf32>
    %cst_19 = arith.constant 1.000000e-01 : f32
    %48 = vector.broadcast %cst_19 : f32 to vector<8x256xf32>
    %49 = arith.mulf %48, %45 : vector<8x256xf32>
    %50 = arith.select %47, %45, %49 : vector<8x256xi1>, vector<8x256xf32>
    %51 = arith.mulf %50, %34 : vector<8x256xf32>
    %cst_20 = arith.constant dense<0.000000e+00> : vector<8x256xf32>
    %52 = tpu.matmul %1, %51, %cst_20 {dimension_numbers = #tpu.dot_dimension_numbers<[1], [0], [0], [1], [0, 0, 1, 1], [], []>} : vector<8x8xf32>, vector<8x256xf32>, vector<8x256xf32> -> vector<8x256xf32>
    %53 = vector.broadcast %5 : vector<8x1xf32> to vector<8x256xf32>
    %54 = arith.addf %52, %53 : vector<8x256xf32>
    %cst_21 = arith.constant 0.000000e+00 : f32
    %55 = vector.broadcast %cst_21 : f32 to vector<8x256xf32>
    %56 = arith.cmpf ogt, %54, %55 : vector<8x256xf32>
    %cst_22 = arith.constant 1.000000e-01 : f32
    %57 = vector.broadcast %cst_22 : f32 to vector<8x256xf32>
    %58 = arith.mulf %57, %54 : vector<8x256xf32>
    %59 = arith.select %56, %54, %58 : vector<8x256xi1>, vector<8x256xf32>
    %60 = arith.mulf %59, %38 : vector<8x256xf32>
    %cst_23 = arith.constant dense<0.000000e+00> : vector<8x256xf32>
    %61 = tpu.matmul %2, %60, %cst_23 {dimension_numbers = #tpu.dot_dimension_numbers<[1], [0], [0], [1], [0, 0, 1, 1], [], []>} : vector<8x8xf32>, vector<8x256xf32>, vector<8x256xf32> -> vector<8x256xf32>
    %62 = vector.broadcast %6 : vector<8x1xf32> to vector<8x256xf32>
    %63 = arith.addf %61, %62 : vector<8x256xf32>
    %cst_24 = arith.constant 0.000000e+00 : f32
    %64 = vector.broadcast %cst_24 : f32 to vector<8x256xf32>
    %65 = arith.cmpf ogt, %63, %64 : vector<8x256xf32>
    %cst_25 = arith.constant 1.000000e-01 : f32
    %66 = vector.broadcast %cst_25 : f32 to vector<8x256xf32>
    %67 = arith.mulf %66, %63 : vector<8x256xf32>
    %68 = arith.select %65, %63, %67 : vector<8x256xi1>, vector<8x256xf32>
    %69 = arith.mulf %68, %42 : vector<8x256xf32>
    %cst_26 = arith.constant dense<0.000000e+00> : vector<8x256xf32>
    %70 = tpu.matmul %3, %69, %cst_26 {dimension_numbers = #tpu.dot_dimension_numbers<[1], [0], [0], [1], [0, 0, 1, 1], [], []>} : vector<8x8xf32>, vector<8x256xf32>, vector<8x256xf32> -> vector<8x256xf32>
    %71 = vector.broadcast %7 : vector<8x1xf32> to vector<8x256xf32>
    %72 = arith.addf %70, %71 : vector<8x256xf32>
    %cst_27 = arith.constant 0.000000e+00 : f32
    %73 = vector.broadcast %cst_27 : f32 to vector<8x256xf32>
    %74 = arith.cmpf ogt, %72, %73 : vector<8x256xf32>
    %cst_28 = arith.constant 1.000000e-01 : f32
    %75 = vector.broadcast %cst_28 : f32 to vector<8x256xf32>
    %76 = arith.mulf %75, %72 : vector<8x256xf32>
    %77 = arith.select %74, %72, %76 : vector<8x256xi1>, vector<8x256xf32>
    %78 = vector.extract_strided_slice %24 {offsets = [16, 0], sizes = [8, 256], strides = [1, 1]} : vector<24x256xf32> to vector<8x256xf32>
    %79 = tpu.concatenate %50, %59, %68, %77, %78 in 0 : vector<8x256xf32>, vector<8x256xf32>, vector<8x256xf32>, vector<8x256xf32>, vector<8x256xf32> -> vector<40x256xf32>
    %cst_29 = arith.constant dense<0.000000e+00> : vector<24x256xf32>
    %80 = tpu.matmul %8, %79, %cst_29 {dimension_numbers = #tpu.dot_dimension_numbers<[1], [0], [0], [1], [0, 0, 1, 1], [], []>} : vector<24x40xf32>, vector<40x256xf32>, vector<24x256xf32> -> vector<24x256xf32>
    %81 = vector.broadcast %9 : vector<24x1xf32> to vector<24x256xf32>
    %82 = arith.addf %80, %81 : vector<24x256xf32>
    %cst_30 = arith.constant 0.000000e+00 : f32
    %83 = vector.broadcast %cst_30 : f32 to vector<24x256xf32>
    %84 = arith.cmpf ogt, %82, %83 : vector<24x256xf32>
    %cst_31 = arith.constant 1.000000e-01 : f32
    %85 = vector.broadcast %cst_31 : f32 to vector<24x256xf32>
    %86 = arith.mulf %85, %82 : vector<24x256xf32>
    %87 = arith.select %84, %82, %86 : vector<24x256xi1>, vector<24x256xf32>
    %88 = arith.addf %87, %24 : vector<24x256xf32>
    %89 = arith.index_cast %c0_i32 : i32 to index
    %c0_32 = arith.constant 0 : index
    %c0_33 = arith.constant 0 : index
    %90 = vector.load %arg4[%89, %c0_32, %c0_33] : memref<2x24x256xf32, #tpu.memory_space<vmem>>, vector<1x24x256xf32>
    %91 = vector.shape_cast %90 : vector<1x24x256xf32> to vector<24x256xf32>
    %92 = vector.shape_cast %88 : vector<24x256xf32> to vector<1x24x256xf32>
    tpu.vector_store %arg4[%89, %c0_32, %c0_33], %92 {strides = array<i32>} : memref<2x24x256xf32, #tpu.memory_space<vmem>>, vector<1x24x256xf32>,
    %c1_i32 = arith.constant 1 : i32
    %93 = arith.index_cast %c1_i32 : i32 to index
    %c0_34 = arith.constant 0 : index
    %c0_35 = arith.constant 0 : index
    %94 = vector.load %arg1[%93, %c0_34, %c0_35] : memref<2x24x256xf32, #tpu.memory_space<vmem>>, vector<1x24x256xf32>
    %95 = vector.shape_cast %94 : vector<1x24x256xf32> to vector<24x256xf32>
    %96 = vector.extract_strided_slice %95 {offsets = [0, 0], sizes = [8, 256], strides = [1, 1]} : vector<24x256xf32> to vector<8x256xf32>
    %97 = vector.extract_strided_slice %95 {offsets = [8, 0], sizes = [8, 256], strides = [1, 1]} : vector<24x256xf32> to vector<8x256xf32>
    %98 = vector.extract_strided_slice %96 {offsets = [0, 1], sizes = [8, 255], strides = [1, 1]} : vector<8x256xf32> to vector<8x255xf32>
    %99 = vector.extract_strided_slice %96 {offsets = [0, 0], sizes = [8, 1], strides = [1, 1]} : vector<8x256xf32> to vector<8x1xf32>
    %100 = tpu.concatenate %98, %99 in 1 : vector<8x255xf32>, vector<8x1xf32> -> vector<8x256xf32>
    %101 = arith.mulf %100, %12 : vector<8x256xf32>
    %102 = vector.extract_strided_slice %96 {offsets = [0, 255], sizes = [8, 1], strides = [1, 1]} : vector<8x256xf32> to vector<8x1xf32>
    %103 = vector.extract_strided_slice %96 {offsets = [0, 0], sizes = [8, 255], strides = [1, 1]} : vector<8x256xf32> to vector<8x255xf32>
    %104 = tpu.concatenate %102, %103 in 1 : vector<8x1xf32>, vector<8x255xf32> -> vector<8x256xf32>
    %105 = arith.mulf %104, %15 : vector<8x256xf32>
    %106 = vector.extract_strided_slice %97 {offsets = [0, 16], sizes = [8, 240], strides = [1, 1]} : vector<8x256xf32> to vector<8x240xf32>
    %107 = vector.extract_strided_slice %97 {offsets = [0, 0], sizes = [8, 16], strides = [1, 1]} : vector<8x256xf32> to vector<8x16xf32>
    %108 = tpu.concatenate %106, %107 in 1 : vector<8x240xf32>, vector<8x16xf32> -> vector<8x256xf32>
    %109 = arith.mulf %108, %18 : vector<8x256xf32>
    %110 = vector.extract_strided_slice %97 {offsets = [0, 240], sizes = [8, 16], strides = [1, 1]} : vector<8x256xf32> to vector<8x16xf32>
    %111 = vector.extract_strided_slice %97 {offsets = [0, 0], sizes = [8, 240], strides = [1, 1]} : vector<8x256xf32> to vector<8x240xf32>
    %112 = tpu.concatenate %110, %111 in 1 : vector<8x16xf32>, vector<8x240xf32> -> vector<8x256xf32>
    %113 = arith.mulf %112, %21 : vector<8x256xf32>
    %cst_36 = arith.constant dense<0.000000e+00> : vector<8x256xf32>
    %114 = tpu.matmul %0, %101, %cst_36 {dimension_numbers = #tpu.dot_dimension_numbers<[1], [0], [0], [1], [0, 0, 1, 1], [], []>} : vector<8x8xf32>, vector<8x256xf32>, vector<8x256xf32> -> vector<8x256xf32>
    %115 = vector.broadcast %4 : vector<8x1xf32> to vector<8x256xf32>
    %116 = arith.addf %114, %115 : vector<8x256xf32>
    %cst_37 = arith.constant 0.000000e+00 : f32
    %117 = vector.broadcast %cst_37 : f32 to vector<8x256xf32>
    %118 = arith.cmpf ogt, %116, %117 : vector<8x256xf32>
    %cst_38 = arith.constant 1.000000e-01 : f32
    %119 = vector.broadcast %cst_38 : f32 to vector<8x256xf32>
    %120 = arith.mulf %119, %116 : vector<8x256xf32>
    %121 = arith.select %118, %116, %120 : vector<8x256xi1>, vector<8x256xf32>
    %122 = arith.mulf %121, %105 : vector<8x256xf32>
    %cst_39 = arith.constant dense<0.000000e+00> : vector<8x256xf32>
    %123 = tpu.matmul %1, %122, %cst_39 {dimension_numbers = #tpu.dot_dimension_numbers<[1], [0], [0], [1], [0, 0, 1, 1], [], []>} : vector<8x8xf32>, vector<8x256xf32>, vector<8x256xf32> -> vector<8x256xf32>
    %124 = vector.broadcast %5 : vector<8x1xf32> to vector<8x256xf32>
    %125 = arith.addf %123, %124 : vector<8x256xf32>
    %cst_40 = arith.constant 0.000000e+00 : f32
    %126 = vector.broadcast %cst_40 : f32 to vector<8x256xf32>
    %127 = arith.cmpf ogt, %125, %126 : vector<8x256xf32>
    %cst_41 = arith.constant 1.000000e-01 : f32
    %128 = vector.broadcast %cst_41 : f32 to vector<8x256xf32>
    %129 = arith.mulf %128, %125 : vector<8x256xf32>
    %130 = arith.select %127, %125, %129 : vector<8x256xi1>, vector<8x256xf32>
    %131 = arith.mulf %130, %109 : vector<8x256xf32>
    %cst_42 = arith.constant dense<0.000000e+00> : vector<8x256xf32>
    %132 = tpu.matmul %2, %131, %cst_42 {dimension_numbers = #tpu.dot_dimension_numbers<[1], [0], [0], [1], [0, 0, 1, 1], [], []>} : vector<8x8xf32>, vector<8x256xf32>, vector<8x256xf32> -> vector<8x256xf32>
    %133 = vector.broadcast %6 : vector<8x1xf32> to vector<8x256xf32>
    %134 = arith.addf %132, %133 : vector<8x256xf32>
    %cst_43 = arith.constant 0.000000e+00 : f32
    %135 = vector.broadcast %cst_43 : f32 to vector<8x256xf32>
    %136 = arith.cmpf ogt, %134, %135 : vector<8x256xf32>
    %cst_44 = arith.constant 1.000000e-01 : f32
    %137 = vector.broadcast %cst_44 : f32 to vector<8x256xf32>
    %138 = arith.mulf %137, %134 : vector<8x256xf32>
    %139 = arith.select %136, %134, %138 : vector<8x256xi1>, vector<8x256xf32>
    %140 = arith.mulf %139, %113 : vector<8x256xf32>
    %cst_45 = arith.constant dense<0.000000e+00> : vector<8x256xf32>
    %141 = tpu.matmul %3, %140, %cst_45 {dimension_numbers = #tpu.dot_dimension_numbers<[1], [0], [0], [1], [0, 0, 1, 1], [], []>} : vector<8x8xf32>, vector<8x256xf32>, vector<8x256xf32> -> vector<8x256xf32>
    %142 = vector.broadcast %7 : vector<8x1xf32> to vector<8x256xf32>
    %143 = arith.addf %141, %142 : vector<8x256xf32>
    %cst_46 = arith.constant 0.000000e+00 : f32
    %144 = vector.broadcast %cst_46 : f32 to vector<8x256xf32>
    %145 = arith.cmpf ogt, %143, %144 : vector<8x256xf32>
    %cst_47 = arith.constant 1.000000e-01 : f32
    %146 = vector.broadcast %cst_47 : f32 to vector<8x256xf32>
    %147 = arith.mulf %146, %143 : vector<8x256xf32>
    %148 = arith.select %145, %143, %147 : vector<8x256xi1>, vector<8x256xf32>
    %149 = vector.extract_strided_slice %95 {offsets = [16, 0], sizes = [8, 256], strides = [1, 1]} : vector<24x256xf32> to vector<8x256xf32>
    %150 = tpu.concatenate %121, %130, %139, %148, %149 in 0 : vector<8x256xf32>, vector<8x256xf32>, vector<8x256xf32>, vector<8x256xf32>, vector<8x256xf32> -> vector<40x256xf32>
    %cst_48 = arith.constant dense<0.000000e+00> : vector<24x256xf32>
    %151 = tpu.matmul %8, %150, %cst_48 {dimension_numbers = #tpu.dot_dimension_numbers<[1], [0], [0], [1], [0, 0, 1, 1], [], []>} : vector<24x40xf32>, vector<40x256xf32>, vector<24x256xf32> -> vector<24x256xf32>
    %152 = vector.broadcast %9 : vector<24x1xf32> to vector<24x256xf32>
    %153 = arith.addf %151, %152 : vector<24x256xf32>
    %cst_49 = arith.constant 0.000000e+00 : f32
    %154 = vector.broadcast %cst_49 : f32 to vector<24x256xf32>
    %155 = arith.cmpf ogt, %153, %154 : vector<24x256xf32>
    %cst_50 = arith.constant 1.000000e-01 : f32
    %156 = vector.broadcast %cst_50 : f32 to vector<24x256xf32>
    %157 = arith.mulf %156, %153 : vector<24x256xf32>
    %158 = arith.select %155, %153, %157 : vector<24x256xi1>, vector<24x256xf32>
    %159 = arith.addf %158, %95 : vector<24x256xf32>
    %160 = arith.index_cast %c1_i32 : i32 to index
    %c0_51 = arith.constant 0 : index
    %c0_52 = arith.constant 0 : index
    %161 = vector.load %arg4[%160, %c0_51, %c0_52] : memref<2x24x256xf32, #tpu.memory_space<vmem>>, vector<1x24x256xf32>
    %162 = vector.shape_cast %161 : vector<1x24x256xf32> to vector<24x256xf32>
    %163 = vector.shape_cast %159 : vector<24x256xf32> to vector<1x24x256xf32>
    tpu.vector_store %arg4[%160, %c0_51, %c0_52], %163 {strides = array<i32>} : memref<2x24x256xf32, #tpu.memory_space<vmem>>, vector<1x24x256xf32>,
    %c2_i32 = arith.constant 2 : i32
    return
  }
  func.func @transform_0(%arg0: i32) -> (i32, i32, i32) {
    %c0_i32 = arith.constant 0 : i32
    %c0_i32_0 = arith.constant 0 : i32
    %c0_i32_1 = arith.constant 0 : i32
    return %arg0, %c0_i32, %c0_i32_0 : i32, i32, i32
  }
  func.func @transform_1(%arg0: i32) -> (i32, i32) {
    %c0_i32 = arith.constant 0 : i32
    %c0_i32_0 = arith.constant 0 : i32
    %c0_i32_1 = arith.constant 0 : i32
    return %c0_i32, %c0_i32_0 : i32, i32
  }
  func.func @transform_2(%arg0: i32) -> (i32, i32) {
    %c0_i32 = arith.constant 0 : i32
    %c0_i32_0 = arith.constant 0 : i32
    %c0_i32_1 = arith.constant 0 : i32
    return %c0_i32, %c0_i32_0 : i32, i32
  }
  func.func @transform_3(%arg0: i32) -> (i32, i32, i32) {
    %c0_i32 = arith.constant 0 : i32
    %c0_i32_0 = arith.constant 0 : i32
    %c0_i32_1 = arith.constant 0 : i32
    return %arg0, %c0_i32, %c0_i32_0 : i32, i32, i32
  }
}

</mosaic_0001>

<bundles_post_ra>
// kernel: tpu_custom_call.1
= control target key start
LH: loop header
LB: loop body
LE: loop exit
PB: predicated region body
PF: predicated region fallthrough
CT: control target
= control target key end

     0   :  { %6 = vsyncpa [#allocation3], 0  ;;  %s118_s0 = inlined_call_operand.hbm [shape: f32[8,128], index: 0, kind: input, shape index: {}]   ;;  %s119_s1 = inlined_call_operand.hbm [shape: f32[8,128], index: 1, kind: output, shape index: {}]  }
   0x1   :  { %7 = vsyncpa [#allocation4], 0  ;;  %s13_s8 = sshll.u32 %s118_s0, 4  ;;  %s99_s9 = smov [#allocation2]   ;;  %s14_s8 = int_to_ptr.hbm [resolvable:$true] %s13_s8 }
   0x2   :  { %s15_s10 = sshll.u32 %s99_s9, 4  ;;  %s16_s10 = int_to_ptr.vmem [resolvable:$true] %s15_s10 }
   0x3   :  { %18 = dma.hbm_to_vmem [thread:$0]  %s14_s8, 128, %s16_s10, [#allocation3]  }
   0x4   :  { %95 = dma.done.wait [#allocation3], 128  }
   0x5   :  { %96 = vsyncadd [#allocation3], 4294967168  ;;  %v23_v0 = vld [vmem:[#allocation2] sm:$0xff]  ;;  %s100_s11 = smov 1   ;;  %s101_s12 = smov [#allocation5]  }
   0x6   :  { %24 = vrot.lane.b32.xlu0 %v23_v0, %s100_s11  ;;  %s32_s13 = sshll.u32 %s101_s12, 4  ;;  %s34_s16 = sshll.u32 %s119_s1, 4  ;;  %s33_s13 = int_to_ptr.vmem [resolvable:$true] %s32_s13  ;;  %s35_s16 = int_to_ptr.hbm [resolvable:$true] %s34_s16 }
  0x78   :  { %v25_v1 = vpop.permute.xlu0 %24 }
  0x79   :  { %26 = vst [vmem:[#allocation5] sm:$0xff] %v25_v1 }
  0x7a   :  { %37 = dma.vmem_to_hbm [thread:$0]  %s33_s13, 128, %s35_s16, [#allocation4]  }
  0x7b   :  { %97 = dma.done.wait [#allocation4], 128  }
  0x7c   :  { %98 = vsyncadd [#allocation4], 4294967168 }
  0x7d   :  { %42 = vsyncpa [#allocation3], 1 }
  0x7e   :  { %43 = vsyncpa [#allocation4], 1 }

// kernel: tpu_custom_call.1
= control target key start
LH: loop header
LB: loop body
LE: loop exit
PB: predicated region body
PF: predicated region fallthrough
CT: control target
= control target key end

     0   :  { %8 = vsyncpa [#allocation3], 0  ;;  %s1286_s0 = inlined_call_operand.hbm [shape: f32[2,24,256], index: 0, kind: input, shape index: {}]   ;;  %s1287_s1 = inlined_call_operand.hbm [shape: f32[4,256], index: 1, kind: input, shape index: {}]   ;;  %s1288_s2 = inlined_call_operand.hbm [shape: f32[32,41], index: 2, kind: input, shape index: {}]   ;;  %s1289_s3 = inlined_call_operand.hbm [shape: f32[2,24,256], index: 3, kind: output, shape index: {}]  }
   0x1   :  { %9 = vsyncpa [#allocation6], 0  ;;  %s29_s14 = sshll.u32 %s1287_s1, 4  ;;  %s30_s14 = int_to_ptr.hbm [resolvable:$true] %s29_s14 }
   0x2   :  { %10 = vsyncpa [#allocation4], 0  ;;  %s978_s15 = smov [#allocation5]   ;;  %s15_s19 = sshll.u32 %s1286_s0, 4  ;;  %s16_s19 = int_to_ptr.hbm [resolvable:$true] %s15_s19 }
   0x3   :  { %s31_s16 = sshll.u32 %s978_s15, 4  ;;  %s979_s20 = smov [#allocation2]   ;;  %s32_s16 = int_to_ptr.vmem [resolvable:$true] %s31_s16 }
   0x4   :  { %34 = dma.hbm_to_vmem [thread:$0]  %s30_s14, 128, %s32_s16, [#allocation6]  }
   0x5   :  { %s17_s21 = sshll.u32 %s979_s20, 4  ;;  %s980_s22 = smov 256   ;;  %s18_s21 = int_to_ptr.vmem [resolvable:$true] %s17_s21 }
   0x6   :  { %s981_s23 = smov 16   ;;  %s39_s25 = sshll.u32 %s1288_s2, 4  ;;  %s40_s25 = int_to_ptr.hbm [resolvable:$true] %s39_s25 }
   0x7   :  { %23 = dma.hbm_to_vmem [thread:$0]  %s16_s19, 1536, %s18_s21, [#allocation3], %s980_s22, %s980_s22, %s981_s23  }
   0x8   :  { %s982_s26 = smov [#allocation7]   ;;  %s983_s0 = smov 128  }
   0x9   :  { %s41_s27 = sshll.u32 %s982_s26, 4  ;;  %s984_s28 = smov 8   ;;  %s42_s27 = int_to_ptr.vmem [resolvable:$true] %s41_s27 }
   0xa   :  { %47 = dma.hbm_to_vmem [thread:$0]  %s40_s25, 512, %s42_s27, [#allocation6], %s983_s0, %s983_s0, %s984_s28  }
   0xb   :  { %972 = dma.done.wait [#allocation3], 1536  }
   0xc   :  { %973 = vsyncadd [#allocation3], 4294965760 }
   0xd   :  { %974 = dma.done.wait [#allocation6], 640  }
   0xe   :  { %975 = vsyncadd [#allocation6], 4294966656  ;;  %v1028_v0 = vld [vmem:[#allocation2] sm:$0xff]  ;;  %s985_s29 = smov 127   ;;  %s986_s30 = smov 1   ;;  %v1034_v1 = vld [vmem:[#allocation2 + $0x8] sm:$0xff] }
   0xf   :  { %99 = vrot.lane.b32.xlu0 %v1028_v0, %s985_s29  ;;  %114 = vrot.lane.b32.xlu2 %v1028_v0, %s986_s30  ;;  %v1038_v2 = vld [vmem:[#allocation7] sm:$0xff]  ;;  %s987_s2 = smov 120   ;;  %v988_v3 = vmov 32   ;;  %v1044_v5 = vld [vmem:[#allocation5] ss:$4 sm:$0x3] }
  0x10   :  { %869 = vset.pattern.permute.xlu1 %v988_v3  ;;  %v66_v6 = vperm.slane %v1044_v5, 0  ;;  %vm103_vm0 = vcmask 1039360   ;;  %v67_v7 = vperm.slane %v1044_v5, 1  ;;  %vm154_vm1 = vcmask 64512   ;;  %v1058_v13 = vld [vmem:[#allocation2 + $0x10] sm:$0xff]  ;;  %v1060_v14 = vld [vmem:[#allocation2 + $0x18] sm:$0xff] }
  0x11   :  { %151 = vperm.xlu1 %869, %v1038_v2   ;;  %v989_v15 = vmov 33   ;;  %s990_s4 = smov 112   ;;  %v1075_v18 = vld [vmem:[#allocation5 + $0x1] ss:$4 sm:$0x3]  ;;  %vm116_vm2 = vcmask 7168  }
  0x12   :  { %870 = vset.pattern.permute.xlu0 %v989_v15  ;;  %v73_v20 = vperm.slane %v1075_v18, 0  ;;  %v74_v21 = vperm.slane %v1075_v18, 1  ;;  %v1099_v37 = vld [vmem:[#allocation2 + $0x30] sm:$0xff]  ;;  %v1101_v38 = vld [vmem:[#allocation2 + $0x38] sm:$0xff]  ;;  %v991_v39 = vmov 34   ;;  %s992_s5 = smov 104  }
  0x13   :  { %871 = vset.pattern.permute.xlu2 %v991_v39  ;;  %v1113_v41 = vld [vmem:[#allocation5 + $0x2] ss:$4 sm:$0x3]  ;;  %vm129_vm5 = vcmask 916480   ;;  %v1139_v61 = vld [vmem:[#allocation2 + $0x48] sm:$0xff]  ;;  %v993_v62 = vmov 35  }
  0x14   :  { %v80_v46 = vperm.slane %v1113_v41, 0  ;;  %v81_v47 = vperm.slane %v1113_v41, 1  ;;  %vm142_vm8 = vcmask 130048   ;;  %v1178_v5 = vld [vmem:[#allocation2 + $0x28] sm:$0xff]  ;;  %v61_v41 = vld [vmem:[#allocation7 + $0x8] sm:$0xff]  ;;  %s995_s6 = smov [#allocation8]  }
  0x15   :  { %s807_s7 = sshll.u32 %s995_s6, 4  ;;  %s809_s10 = sshll.u32 %s1289_s3, 4  ;;  %s808_s7 = int_to_ptr.vmem [resolvable:$true] %s807_s7  ;;  %s810_s10 = int_to_ptr.hbm [resolvable:$true] %s809_s10 }
  0x17   :  { %101 = vrot.lane.b32.xlu0 %v1034_v1, %s985_s29  ;;  %209 = vrot.lane.b32.xlu2 %v1038_v2, %s987_s2 }
  0x19   :  { %111 = vrot.lane.b32.xlu1 %v1034_v1, %s986_s30 }
  0x1f   :  { %206 = vperm.xlu0 %870, %v1038_v2   ;;  %127 = vrot.lane.b32.xlu2 %v1060_v14, %s990_s4 }
  0x21   :  { %125 = vrot.lane.b32.xlu1 %v1058_v13, %s990_s4 }
  0x27   :  { %137 = vrot.lane.b32.xlu0 %v1060_v14, %s981_s23  ;;  %262 = vperm.xlu2 %871, %v1038_v2  }
  0x29   :  { %265 = vrot.lane.b32.xlu1 %v1038_v2, %s990_s4 }
  0x2f   :  { %484 = vrot.lane.b32.xlu0 %v1099_v37, %s985_s29  ;;  %321 = vrot.lane.b32.xlu2 %v1038_v2, %s992_s5 }
  0x30   :  { %872 = vset.pattern.permute.xlu2 %v993_v62 }
  0x31   :  { %140 = vrot.lane.b32.xlu1 %v1058_v13, %s981_s23 }
  0x37   :  { %498 = vrot.lane.b32.xlu0 %v1099_v37, %s986_s30  ;;  %495 = vrot.lane.b32.xlu2 %v1101_v38, %s986_s30 }
  0x39   :  { %486 = vrot.lane.b32.xlu1 %v1101_v38, %s985_s29 }
  0x3f   :  { %510 = vrot.lane.b32.xlu2 %v1139_v61, %s990_s4  ;;  %519 = vrot.lane.b32.xlu0 %v1139_v61, %s981_s23 }
  0x47   :  { %318 = vperm.xlu2 %872, %v1038_v2  }
  0x69   :  { %v115_v17 = vpop.permute.xlu2 %114 }
  0x71   :  { %v1091_v34 = vpop.permute.xlu2 %209 }
  0x79   :  { %v128_v43 = vpop.permute.xlu2 %127 }
  0x81   :  { %v100_v4 = vpop.permute.xlu0 %99 }
  0x83   :  { %v1071_v16 = vpop.permute.xlu1 %151 }
  0x89   :  { %v102_v8 = vpop.permute.xlu0 %101 }
  0x8a   :  { %v104_v9 = vsel %vm103_vm0, %v100_v4, %v102_v8  ;;  %v108_v10 = vsel %vm103_vm0, %v102_v8, %v100_v4  ;;  %v1146_v4 = vld [vmem:[#allocation5 + $0x3] ss:$4 sm:$0x3]  ;;  %v1148_v8 = vpop.permute.xlu2 %262 }
  0x8b   :  { %v109_v11 = vmul.f32 %v104_v9, %v66_v6  ;;  %v110_v12 = vmul.f32 %v108_v10, %v67_v7  ;;  %v112_v19 = vpop.permute.xlu1 %111  ;;  %v87_v9 = vperm.slane %v1146_v4, 0  ;;  %v88_v10 = vperm.slane %v1146_v4, 1 }
  0x8c   :  { %v117_v24 = vsel %vm116_vm2, %v115_v17, %v112_v19  ;;  %v120_v25 = vsel %vm116_vm2, %v112_v19, %v115_v17  ;;  %v994_v4 = vmov 40  }
  0x8d   :  { %172 = vmatpush.msra.mxu2 %v109_v11  ;;  %192 = vmatpush.msra.mxu3 %v110_v12  ;;  %v121_v30 = vmul.f32 %v120_v25, %v73_v20  ;;  %v122_v31 = vmul.f32 %v117_v24, %v74_v21 }
  0x8e   :  { %823 = vmatmul.msk.f32.vlgmr.msra.gmra.mxu2 %vm154_vm1, %v1038_v2  ;;  %824 = vmatmul.msk.f32.vlgmr.msra.gmra.mxu3 %vm154_vm1, %v1038_v2 }
  0x8f   :  { %873 = vset.pattern.permute.xlu0 %v994_v4  ;;  %874 = vset.pattern.permute.xlu1 %v994_v4 }
  0x90   :  { %373 = vperm.xlu0 %873, %v61_v41   ;;  %875 = vset.pattern.permute.xlu2 %v994_v4 }
  0x91   :  { %v1115_v42 = vpop.permute.xlu0 %206 }
  0x93   :  { %v126_v40 = vpop.permute.xlu1 %125 }
  0x94   :  { %v130_v48 = vsel %vm129_vm5, %v126_v40, %v128_v43  ;;  %v134_v49 = vsel %vm129_vm5, %v128_v43, %v126_v40  ;;  %v1162_v40 = vpop.permute.xlu2 %321 }
  0x95   :  { %v135_v54 = vmul.f32 %v130_v48, %v80_v46  ;;  %v136_v55 = vmul.f32 %v134_v49, %v81_v47 }
  0x99   :  { %v138_v63 = vpop.permute.xlu0 %137 }
  0x9b   :  { %v1131_v58 = vpop.permute.xlu1 %265 }
  0xa1   :  { %v485_v15 = vpop.permute.xlu0 %484 }
  0xa3   :  { %v141_v3 = vpop.permute.xlu1 %140 }
  0xa4   :  { %v143_v11 = vsel %vm142_vm8, %v141_v3, %v138_v63  ;;  %v146_v12 = vsel %vm142_vm8, %v138_v63, %v141_v3 }
  0xa5   :  { %v147_v25 = vmul.f32 %v146_v12, %v87_v9 }
  0xab   :  { %v487_v17 = vpop.permute.xlu1 %486 }
 0x111   :  { %v174_v22 = vpop.f32.mrf.mxu2  ;;  %v194_v23 = vpop.f32.mrf.mxu3 }
 0x112   :  { %v175_v26 = vadd.f32 %v174_v22, %v1071_v16  ;;  %v195_v27 = vadd.f32 %v194_v23, %v1071_v16 }
 0x114   :  { %v199_v28 = vmul.f32 0.1, %v175_v26  ;;  %v200_v29 = vmul.f32 0.1, %v195_v27  ;;  %vm197_vm3 = vcmp.gt.f32.partialorder %v175_v26, 0.0  ;;  %vm198_vm4 = vcmp.gt.f32.partialorder %v195_v27, 0.0 }
 0x116   :  { %v1087_v32 = vsel %vm197_vm3, %v175_v26, %v199_v28  ;;  %v1089_v33 = vsel %vm198_vm4, %v195_v27, %v200_v29  ;;  %v148_v26 = vmul.f32 %v143_v11, %v88_v10  ;;  %v488_v27 = vsel %vm103_vm0, %v485_v15, %v487_v17 }
 0x117   :  { %v203_v35 = vmul.f32 %v1087_v32, %v121_v30  ;;  %v204_v36 = vmul.f32 %v1089_v33, %v122_v31  ;;  %v492_v28 = vsel %vm103_vm0, %v487_v17, %v485_v15  ;;  %v493_v43 = vmul.f32 %v488_v27, %v66_v6  ;;  %v1176_v6 = vld [vmem:[#allocation2 + $0x20] sm:$0xff] }
 0x119   :  { %228 = vmatpush.msrb.mxu2 %v203_v35  ;;  %248 = vmatpush.msrb.mxu3 %v204_v36 }
 0x11a   :  { %825 = vmatmul.msk.f32.vlgmr.msrb.gmra.mxu2 %vm154_vm1, %v1091_v34  ;;  %826 = vmatmul.msk.f32.vlgmr.msrb.gmra.mxu3 %vm154_vm1, %v1091_v34 }
 0x19d   :  { %v230_v44 = vpop.f32.mrf.mxu2  ;;  %v250_v45 = vpop.f32.mrf.mxu3 }
 0x19e   :  { %v231_v50 = vadd.f32 %v230_v44, %v1115_v42  ;;  %v251_v51 = vadd.f32 %v250_v45, %v1115_v42  ;;  %v494_v44 = vmul.f32 %v492_v28, %v67_v7  ;;  %v496_v7 = vpop.permute.xlu2 %495  ;;  %v1182_v45 = vld [vmem:[#allocation2 + $0x40] sm:$0xff] }
 0x19f   :  { %508 = vrot.lane.b32.xlu1 %v1182_v45, %s990_s4 }
 0x1a0   :  { %v255_v52 = vmul.f32 0.1, %v231_v50  ;;  %v256_v53 = vmul.f32 0.1, %v251_v51  ;;  %vm253_vm6 = vcmp.gt.f32.partialorder %v231_v50, 0.0  ;;  %vm254_vm7 = vcmp.gt.f32.partialorder %v251_v51, 0.0 }
 0x1a2   :  { %v1127_v56 = vsel %vm253_vm6, %v231_v50, %v255_v52  ;;  %v1129_v57 = vsel %vm254_vm7, %v251_v51, %v256_v53 }
 0x1a3   :  { %v259_v59 = vmul.f32 %v1127_v56, %v135_v54  ;;  %v260_v60 = vmul.f32 %v1129_v57, %v136_v55  ;;  %v499_v55 = vpop.permute.xlu0 %498 }
 0x1a4   :  { %v500_v62 = vsel %vm116_vm2, %v499_v55, %v496_v7  ;;  %v503_v63 = vsel %vm116_vm2, %v496_v7, %v499_v55  ;;  %vm386_vm2 = vcmask 326656  }
 0x1a5   :  { %284 = vmatpush.msra.mxu0 %v259_v59  ;;  %304 = vmatpush.msra.mxu1 %v260_v60  ;;  %v504_v17 = vmul.f32 %v503_v63, %v73_v20 }
 0x1a6   :  { %827 = vmatmul.msk.f32.vlgmr.msra.gmra.mxu0 %vm154_vm1, %v1131_v58  ;;  %828 = vmatmul.msk.f32.vlgmr.msra.gmra.mxu1 %vm154_vm1, %v1131_v58  ;;  %v511_v48 = vpop.permute.xlu2 %510 }
 0x1a7   :  { %404 = vmatpush.msrb.mxu0 %v1176_v6  ;;  %430 = vmatpush.msrb.mxu1 %v1178_v5 }
 0x1a8   :  { %522 = vrot.lane.b32.xlu1 %v1182_v45, %s981_s23 }
 0x1ae   :  { %v1188_v49 = vpop.permute.xlu2 %318 }
 0x223   :  { %v286_v19 = vpop.f32.mrf.mxu0  ;;  %v306_v22 = vpop.f32.mrf.mxu1 }
 0x224   :  { %v287_v23 = vadd.f32 %v286_v19, %v1148_v8  ;;  %v307_v24 = vadd.f32 %v306_v22, %v1148_v8  ;;  %v505_v19 = vmul.f32 %v500_v62, %v74_v21  ;;  %v509_v21 = vpop.permute.xlu1 %508 }
 0x226   :  { %vm309_vm9 = vcmp.gt.f32.partialorder %v287_v23, 0.0  ;;  %v311_v29 = vmul.f32 0.1, %v287_v23  ;;  %vm310_vm10 = vcmp.gt.f32.partialorder %v307_v24, 0.0  ;;  %v312_v30 = vmul.f32 0.1, %v307_v24 }
 0x228   :  { %v313_v31 = vsel %vm309_vm9, %v287_v23, %v311_v29  ;;  %v314_v35 = vsel %vm310_vm10, %v307_v24, %v312_v30 }
 0x229   :  { %v315_v36 = vmul.f32 %v313_v31, %v147_v25  ;;  %v316_v39 = vmul.f32 %v314_v35, %v148_v26 }
 0x22b   :  { %340 = vmatpush.msra.mxu2 %v315_v36  ;;  %360 = vmatpush.msra.mxu3 %v316_v39 }
 0x22c   :  { %829 = vmatmul.msk.f32.vlgmr.msra.gmra.mxu2 %vm154_vm1, %v1162_v40  ;;  %830 = vmatmul.msk.f32.vlgmr.msra.gmra.mxu3 %vm154_vm1, %v1162_v40 }
 0x22d   :  { %545 = vmatpush.msrb.mxu2 %v493_v43  ;;  %565 = vmatpush.msrb.mxu3 %v494_v44 }
 0x234   :  { %837 = vmatmul.msk.f32.vlgmr.msrb.gmra.mxu2 %vm154_vm1, %v1038_v2  ;;  %838 = vmatmul.msk.f32.vlgmr.msrb.gmra.mxu3 %vm154_vm1, %v1038_v2 }
 0x2af   :  { %v342_v2 = vpop.f32.mrf.mxu2  ;;  %v362_v50 = vpop.f32.mrf.mxu3 }
 0x2b0   :  { %v343_v51 = vadd.f32 %v342_v2, %v1188_v49  ;;  %v363_v52 = vadd.f32 %v362_v50, %v1188_v49 }
 0x2b2   :  { %vm365_vm11 = vcmp.gt.f32.partialorder %v343_v51, 0.0  ;;  %v367_v53 = vmul.f32 0.1, %v343_v51  ;;  %vm366_vm12 = vcmp.gt.f32.partialorder %v363_v52, 0.0  ;;  %v368_v54 = vmul.f32 0.1, %v363_v52 }
 0x2b4   :  { %v369_v59 = vsel %vm365_vm11, %v343_v51, %v367_v53  ;;  %v370_v60 = vsel %vm366_vm12, %v363_v52, %v368_v54 }
 0x2b5   :  { %405 = vmatpush.msrb.mxu0 %v369_v59  ;;  %431 = vmatpush.msrb.mxu1 %v370_v60  ;;  %v1250_v59 = vld [vmem:[#allocation2 + $0x58] sm:$0xff] }
 0x2b7   :  { %406 = vmatpush.msrb.mxu0 %v313_v31  ;;  %432 = vmatpush.msrb.mxu1 %v314_v35  ;;  %v547_v3 = vpop.f32.mrf.mxu2  ;;  %v567_v11 = vpop.f32.mrf.mxu3 }
 0x2b8   :  { %v548_v12 = vadd.f32 %v547_v3, %v1071_v16  ;;  %v568_v15 = vadd.f32 %v567_v11, %v1071_v16 }
 0x2b9   :  { %407 = vmatpush.msrb.mxu0 %v1127_v56  ;;  %433 = vmatpush.msrb.mxu1 %v1129_v57 }
 0x2ba   :  { %vm570_vm13 = vcmp.gt.f32.partialorder %v548_v12, 0.0  ;;  %v572_v22 = vmul.f32 0.1, %v548_v12  ;;  %vm571_vm14 = vcmp.gt.f32.partialorder %v568_v15, 0.0  ;;  %v573_v23 = vmul.f32 0.1, %v568_v15 }
 0x2bb   :  { %408 = vmatpush.msrb.mxu0 %v1087_v32  ;;  %434 = vmatpush.msrb.mxu1 %v1089_v33  ;;  %v512_v32 = vsel %vm129_vm5, %v509_v21, %v511_v48  ;;  %v516_v33 = vsel %vm129_vm5, %v511_v48, %v509_v21 }
 0x2bc   :  { %v1204_v24 = vsel %vm570_vm13, %v548_v12, %v572_v22  ;;  %v1206_v16 = vsel %vm571_vm14, %v568_v15, %v573_v23  ;;  %v517_v27 = vmul.f32 %v512_v32, %v80_v46  ;;  %v518_v28 = vmul.f32 %v516_v33, %v81_v47  ;;  %831 = vmatmul.msk.f32.vlgmr.msrb.gmra.mxu0 %vm386_vm2, %v61_v41  ;;  %v523_v46 = vpop.permute.xlu1 %522 }
 0x2bd   :  { %v576_v20 = vmul.f32 %v1204_v24, %v504_v17  ;;  %v577_v18 = vmul.f32 %v1206_v16, %v505_v19  ;;  %834 = vmatmul.msk.f32.vlgmr.msrb.gmra.mxu1 %vm386_vm2, %v61_v41 }
 0x2be   :  { %757 = vmatpush.msra.mxu1 %v1250_v59 }
 0x2bf   :  { %593 = vmatpush.msra.mxu2 %v576_v20  ;;  %613 = vmatpush.msra.mxu3 %v577_v18 }
 0x2c0   :  { %839 = vmatmul.msk.f32.vlgmr.msra.gmra.mxu2 %vm154_vm1, %v1091_v34  ;;  %840 = vmatmul.msk.f32.vlgmr.msra.gmra.mxu3 %vm154_vm1, %v1091_v34 }
 0x33a   :  { %v436_v17 = vpop.f32.mrf.mxu1 }
 0x343   :  { %v595_v56 = vpop.f32.mrf.mxu2  ;;  %v615_v57 = vpop.f32.mrf.mxu3 }
 0x344   :  { %v596_v25 = vadd.f32 %v595_v56, %v1115_v42  ;;  %v616_v26 = vadd.f32 %v615_v57, %v1115_v42  ;;  %v520_v42 = vpop.permute.xlu0 %519 }
 0x345   :  { %v524_v47 = vsel %vm142_vm8, %v523_v46, %v520_v42  ;;  %v527_v39 = vsel %vm142_vm8, %v520_v42, %v523_v46 }
 0x346   :  { %vm618_vm15 = vcmp.gt.f32.partialorder %v596_v25, 0.0  ;;  %v620_v29 = vmul.f32 0.1, %v596_v25  ;;  %vm619_vm0 = vcmp.gt.f32.partialorder %v616_v26, 0.0  ;;  %v621_v34 = vmul.f32 0.1, %v616_v26 }
 0x347   :  { %v529_v2 = vmul.f32 %v524_v47, %v88_v10  ;;  %v1248_v10 = vld [vmem:[#allocation2 + $0x50] sm:$0xff] }
 0x348   :  { %v1222_v30 = vsel %vm618_vm15, %v596_v25, %v620_v29  ;;  %v1224_v31 = vsel %vm619_vm0, %v616_v26, %v621_v34  ;;  %731 = vmatpush.msra.mxu0 %v1248_v10 }
 0x349   :  { %v624_v35 = vmul.f32 %v1222_v30, %v517_v27  ;;  %v625_v36 = vmul.f32 %v1224_v31, %v518_v28 }
 0x34b   :  { %641 = vmatpush.msrb.mxu2 %v624_v35  ;;  %661 = vmatpush.msrb.mxu3 %v625_v36 }
 0x34c   :  { %841 = vmatmul.msk.f32.vlgmr.msrb.gmra.mxu2 %vm154_vm1, %v1131_v58  ;;  %842 = vmatmul.msk.f32.vlgmr.msrb.gmra.mxu3 %vm154_vm1, %v1131_v58  ;;  %v528_v58 = vmul.f32 %v527_v39, %v87_v9  ;;  %v63_v9 = vld [vmem:[#allocation7 + $0x18] sm:$0xff]  ;;  %v374_v19 = vpop.permute.xlu0 %373 }
 0x34d   :  { %383 = vperm.xlu2 %875, %v63_v9   ;;  %v437_v23 = vadd.f32 %v436_v17, %v374_v19 }
 0x34f   :  { %vm446_vm7 = vcmp.gt.f32.partialorder %v437_v23, 0.0 }
 0x3cf   :  { %v643_v43 = vpop.f32.mrf.mxu2  ;;  %v663_v44 = vpop.f32.mrf.mxu3 }
 0x3d0   :  { %v644_v7 = vadd.f32 %v643_v43, %v1148_v8  ;;  %v664_v48 = vadd.f32 %v663_v44, %v1148_v8  ;;  %v62_v8 = vld [vmem:[#allocation7 + $0x10] sm:$0xff] }
 0x3d1   :  { %832 = vmatmul.msk.f32.gmra.mxu0 %vm386_vm2, %v62_v8  ;;  %835 = vmatmul.msk.f32.gmra.mxu1 %vm386_vm2, %v62_v8 }
 0x3d2   :  { %vm666_vm3 = vcmp.gt.f32.partialorder %v644_v7, 0.0  ;;  %v668_v50 = vmul.f32 0.1, %v644_v7  ;;  %vm667_vm4 = vcmp.gt.f32.partialorder %v664_v48, 0.0  ;;  %v669_v51 = vmul.f32 0.1, %v664_v48  ;;  %378 = vperm.xlu1 %874, %v62_v8  }
 0x3d4   :  { %v670_v52 = vsel %vm666_vm3, %v644_v7, %v668_v50  ;;  %v671_v53 = vsel %vm667_vm4, %v664_v48, %v669_v51 }
 0x3d5   :  { %v672_v54 = vmul.f32 %v670_v52, %v528_v58  ;;  %v673_v55 = vmul.f32 %v671_v53, %v529_v2 }
 0x3d7   :  { %689 = vmatpush.msra.mxu2 %v672_v54  ;;  %709 = vmatpush.msra.mxu3 %v673_v55 }
 0x3d8   :  { %843 = vmatmul.msk.f32.vlgmr.msra.gmra.mxu2 %vm154_vm1, %v1162_v40  ;;  %844 = vmatmul.msk.f32.vlgmr.msra.gmra.mxu3 %vm154_vm1, %v1162_v40 }
 0x3d9   :  { %833 = vmatmul.msk.f32.gmra.mxu0 %vm386_vm2, %v63_v9  ;;  %836 = vmatmul.msk.f32.gmra.mxu1 %vm386_vm2, %v63_v9 }
 0x444   :  { %v379_v33 = vpop.permute.xlu1 %378 }
 0x44e   :  { %v439_v57 = vpop.f32.mrf.mxu1 }
 0x44f   :  { %v440_v26 = vadd.f32 %v439_v57, %v379_v33 }
 0x451   :  { %vm448_vm9 = vcmp.gt.f32.partialorder %v440_v26, 0.0  ;;  %v454_v28 = vmul.f32 0.1, %v440_v26 }
 0x453   :  { %v460_v34 = vsel %vm448_vm9, %v440_v26, %v454_v28 }
 0x456   :  { %v442_v35 = vpop.f32.mrf.mxu1 }
 0x45b   :  { %v691_v40 = vpop.f32.mrf.mxu2  ;;  %v711_v60 = vpop.f32.mrf.mxu3 }
 0x45c   :  { %v692_v62 = vadd.f32 %v691_v40, %v1188_v49  ;;  %v712_v63 = vadd.f32 %v711_v60, %v1188_v49  ;;  %v410_v49 = vpop.f32.mrf.mxu0 }
 0x45d   :  { %v411_v22 = vadd.f32 %v410_v49, %v374_v19 }
 0x45e   :  { %v716_v3 = vmul.f32 0.1, %v692_v62  ;;  %v717_v11 = vmul.f32 0.1, %v712_v63  ;;  %vm714_vm1 = vcmp.gt.f32.partialorder %v692_v62, 0.0  ;;  %vm715_vm5 = vcmp.gt.f32.partialorder %v712_v63, 0.0 }
 0x45f   :  { %vm445_vm6 = vcmp.gt.f32.partialorder %v411_v22, 0.0 }
 0x460   :  { %v718_v12 = vsel %vm714_vm1, %v692_v62, %v716_v3  ;;  %v719_v15 = vsel %vm715_vm5, %v712_v63, %v717_v11 }
 0x461   :  { %732 = vmatpush.msra.mxu0 %v718_v12  ;;  %758 = vmatpush.msra.mxu1 %v719_v15 }
 0x463   :  { %733 = vmatpush.msra.mxu0 %v670_v52  ;;  %759 = vmatpush.msra.mxu1 %v671_v53 }
 0x464   :  { %v413_v56 = vpop.f32.mrf.mxu0 }
 0x465   :  { %734 = vmatpush.msra.mxu0 %v1222_v30  ;;  %760 = vmatpush.msra.mxu1 %v1224_v31  ;;  %v414_v25 = vadd.f32 %v413_v56, %v379_v33  ;;  %v466_v31 = vadd.f32 %v460_v34, %v1060_v14 }
 0x467   :  { %735 = vmatpush.msra.mxu0 %v1204_v24  ;;  %761 = vmatpush.msra.mxu1 %v1206_v16  ;;  %v451_v24 = vmul.f32 0.1, %v411_v22  ;;  %v452_v16 = vmul.f32 0.1, %v437_v23  ;;  %vm447_vm8 = vcmp.gt.f32.partialorder %v414_v25, 0.0  ;;  %472 = vst [vmem:[#allocation8 + $0x18] sm:$0xff] %v466_v31 }
 0x468   :  { %845 = vmatmul.msk.f32.vlgmr.msra.gmra.mxu0 %vm386_vm2, %v61_v41  ;;  %848 = vmatmul.msk.f32.vlgmr.msra.gmra.mxu1 %vm386_vm2, %v61_v41  ;;  %v453_v27 = vmul.f32 0.1, %v414_v25 }
 0x469   :  { %v457_v20 = vsel %vm445_vm6, %v411_v22, %v451_v24  ;;  %v458_v18 = vsel %vm446_vm7, %v437_v23, %v452_v16 }
 0x46a   :  { %v463_v21 = vadd.f32 %v457_v20, %v1028_v0  ;;  %v464_v32 = vadd.f32 %v458_v18, %v1034_v1  ;;  %v459_v29 = vsel %vm447_vm8, %v414_v25, %v453_v27  ;;  %v384_v0 = vpop.permute.xlu2 %383 }
 0x46b   :  { %v465_v30 = vadd.f32 %v459_v29, %v1058_v13  ;;  %v443_v41 = vadd.f32 %v442_v35, %v384_v0 }
 0x46c   :  { %469 = vst [vmem:[#allocation8] sm:$0xff] %v463_v21  ;;  %v416_v1 = vpop.f32.mrf.mxu0 }
 0x46d   :  { %470 = vst [vmem:[#allocation8 + $0x8] sm:$0xff] %v464_v32  ;;  %v417_v36 = vadd.f32 %v416_v1, %v384_v0  ;;  %vm450_vm11 = vcmp.gt.f32.partialorder %v443_v41, 0.0  ;;  %v456_v46 = vmul.f32 0.1, %v443_v41 }
 0x46e   :  { %471 = vst [vmem:[#allocation8 + $0x10] sm:$0xff] %v465_v30 }
 0x46f   :  { %vm449_vm10 = vcmp.gt.f32.partialorder %v417_v36, 0.0  ;;  %v455_v42 = vmul.f32 0.1, %v417_v36  ;;  %v462_v39 = vsel %vm450_vm11, %v443_v41, %v456_v46 }
 0x470   :  { %846 = vmatmul.msk.f32.gmra.mxu0 %vm386_vm2, %v62_v8  ;;  %849 = vmatmul.msk.f32.gmra.mxu1 %vm386_vm2, %v62_v8  ;;  %v468_v44 = vadd.f32 %v462_v39, %v1178_v5 }
 0x471   :  { %v461_v47 = vsel %vm449_vm10, %v417_v36, %v455_v42 }
 0x472   :  { %v467_v43 = vadd.f32 %v461_v47, %v1176_v6  ;;  %474 = vst [vmem:[#allocation8 + $0x28] sm:$0xff] %v468_v44 }
 0x474   :  { %473 = vst [vmem:[#allocation8 + $0x20] sm:$0xff] %v467_v43 }
 0x478   :  { %847 = vmatmul.msk.f32.gmra.mxu0 %vm386_vm2, %v63_v9  ;;  %850 = vmatmul.msk.f32.gmra.mxu1 %vm386_vm2, %v63_v9 }
 0x4e5   :  { %v737_v13 = vpop.f32.mrf.mxu0  ;;  %v763_v14 = vpop.f32.mrf.mxu1 }
 0x4e6   :  { %v738_v7 = vadd.f32 %v737_v13, %v374_v19  ;;  %v764_v48 = vadd.f32 %v763_v14, %v374_v19 }
 0x4e8   :  { %vm772_vm12 = vcmp.gt.f32.partialorder %v738_v7, 0.0  ;;  %v778_v58 = vmul.f32 0.1, %v738_v7  ;;  %vm773_vm13 = vcmp.gt.f32.partialorder %v764_v48, 0.0  ;;  %v779_v2 = vmul.f32 0.1, %v764_v48 }
 0x4ea   :  { %v784_v50 = vsel %vm772_vm12, %v738_v7, %v778_v58  ;;  %v785_v51 = vsel %vm773_vm13, %v764_v48, %v779_v2 }
 0x4eb   :  { %v790_v52 = vadd.f32 %v784_v50, %v1099_v37  ;;  %v791_v53 = vadd.f32 %v785_v51, %v1101_v38 }
 0x4ed   :  { %797 = vst [vmem:[#allocation8 + $0x30] sm:$0xff] %v790_v52  ;;  %v740_v6 = vpop.f32.mrf.mxu0  ;;  %v766_v54 = vpop.f32.mrf.mxu1 }
 0x4ee   :  { %798 = vst [vmem:[#allocation8 + $0x38] sm:$0xff] %v791_v53  ;;  %v741_v5 = vadd.f32 %v740_v6, %v379_v33  ;;  %v767_v55 = vadd.f32 %v766_v54, %v379_v33 }
 0x4f0   :  { %vm774_vm14 = vcmp.gt.f32.partialorder %v741_v5, 0.0  ;;  %v780_v8 = vmul.f32 0.1, %v741_v5  ;;  %vm775_vm15 = vcmp.gt.f32.partialorder %v767_v55, 0.0  ;;  %v781_v4 = vmul.f32 0.1, %v767_v55 }
 0x4f2   :  { %v786_v9 = vsel %vm774_vm14, %v741_v5, %v780_v8  ;;  %v787_v40 = vsel %vm775_vm15, %v767_v55, %v781_v4 }
 0x4f3   :  { %v792_v60 = vadd.f32 %v786_v9, %v1182_v45  ;;  %v793_v62 = vadd.f32 %v787_v40, %v1139_v61 }
 0x4f5   :  { %799 = vst [vmem:[#allocation8 + $0x40] sm:$0xff] %v792_v60  ;;  %v743_v37 = vpop.f32.mrf.mxu0  ;;  %v769_v63 = vpop.f32.mrf.mxu1 }
 0x4f6   :  { %800 = vst [vmem:[#allocation8 + $0x48] sm:$0xff] %v793_v62  ;;  %v744_v38 = vadd.f32 %v743_v37, %v384_v0  ;;  %v770_v3 = vadd.f32 %v769_v63, %v384_v0 }
 0x4f8   :  { %vm776_vm0 = vcmp.gt.f32.partialorder %v744_v38, 0.0  ;;  %v782_v11 = vmul.f32 0.1, %v744_v38  ;;  %vm777_vm2 = vcmp.gt.f32.partialorder %v770_v3, 0.0  ;;  %v783_v12 = vmul.f32 0.1, %v770_v3 }
 0x4fa   :  { %v788_v15 = vsel %vm776_vm0, %v744_v38, %v782_v11  ;;  %v789_v45 = vsel %vm777_vm2, %v770_v3, %v783_v12 }
 0x4fb   :  { %v794_v61 = vadd.f32 %v788_v15, %v1248_v10  ;;  %v795_v49 = vadd.f32 %v789_v45, %v1250_v59 }
 0x4fd   :  { %801 = vst [vmem:[#allocation8 + $0x50] sm:$0xff] %v794_v61 }
 0x4fe   :  { %802 = vst [vmem:[#allocation8 + $0x58] sm:$0xff] %v795_v49 }
 0x4ff   :  { %815 = dma.vmem_to_hbm [thread:$0]  %s808_s7, 1536, %s810_s10, [#allocation4], %s980_s22, %s980_s22, %s981_s23  }
 0x500   :  { %976 = dma.done.wait [#allocation4], 1536  }
 0x501   :  { %977 = vsyncadd [#allocation4], 4294965760 }
 0x502   :  { %820 = vsyncpa [#allocation3], 1 }
 0x503   :  { %821 = vsyncpa [#allocation6], 1 }
 0x504   :  { %822 = vsyncpa [#allocation4], 1 }

</bundles_post_ra>
